<compile_context>
chip_gen: v5e
topology: v5e:2x2
jax: 0.10.0
libtpu: 0.0.40
codegen_flags: <defaults>
</compile_context>

<pallas_src>
import functools

import jax
import jax.numpy as jnp
from jax.experimental import pallas as pl
from jax.experimental.pallas import tpu as pltpu


def _round_up(x, m):
    return ((x + m - 1) // m) * m


# ----------------------------------------------------------------------------
# Fused kernel (one grid step = one B-tile):
#   x      [TB, D_in]            f32
#   w1     [D_in, E*H]           bf16   columns e*H:(e+1)*H = W1[e]
#   wm     [E*H, Z]              bf16   rows e*H:(e+1)*H = Wm[e] / E
#   wd     [Z, ND*Hd]            bf16   selected decoders' first layers (concat)
#   wo     [ND*Hd, ND*D_out]     bf16   block-diagonal second layers
#   bias   [1, E*H + Z + ND*Hd + ND*D_out]   f32 (single operand)
#   out    [TB, round_up(E*H + Z + ND*D_out, 128)]  f32 lane-dense slab
# ----------------------------------------------------------------------------
@functools.lru_cache(maxsize=None)
def _make_fused_kernel(eh, z, ndh, ndo, slab_w):
    total = eh + z + ndo
    pad = slab_w - total

    def kernel(x_ref, w1_ref, wm_ref, wd_ref, wo_ref, b_ref, o_ref):
        # Static slices of the single concatenated bias operand.
        b1 = b_ref[:, 0:eh]
        bm = b_ref[:, eh:eh + z]
        bd = b_ref[:, eh + z:eh + z + ndh]
        bo = b_ref[:, eh + z + ndh:eh + z + ndh + ndo]

        # bf16 MXU inputs, f32 accumulation; activation math stays in f32
        # (v5e VPU/EUP have no bf16).
        x16 = x_ref[...].astype(jnp.bfloat16)
        h = jnp.tanh(
            jnp.dot(x16, w1_ref[...], preferred_element_type=jnp.float32) + b1)

        # Row-stacked, 1/E-prescaled mu head: one dot gives the ensemble mean.
        zs = (jnp.dot(h.astype(jnp.bfloat16), wm_ref[...],
                      preferred_element_type=jnp.float32) + bm)

        # Selected decoders: concat first layer + block-diagonal second layer.
        hd = jnp.maximum(
            jnp.dot(zs.astype(jnp.bfloat16), wd_ref[...],
                    preferred_element_type=jnp.float32) + bd, 0.0)
        y = (jnp.dot(hd.astype(jnp.bfloat16), wo_ref[...],
                     preferred_element_type=jnp.float32) + bo)

        # Single lane-dense slab: [enc | zs | dec | zero pad].
        o_ref[:, 0:eh] = h
        o_ref[:, eh:eh + z] = zs
        o_ref[:, eh + z:total] = y
        if pad > 0:
            o_ref[:, total:slab_w] = jnp.zeros((h.shape[0], pad), jnp.float32)

    return kernel


def fused_forward(x, w1_cat, wm_cat, wd_cat, wo_bd, bias_cat, *,
                  eh, z, ndh, ndo, tile_b=256):
    """Runs the fused encoder + mean head + decoders. Returns [B, slab_w] f32."""
    b, d_in = x.shape
    total = eh + z + ndo
    slab_w = _round_up(total, 128)

    # Row tile: 256 fills the MXU row dim on v6e/v7x (128 already saturates
    # v5e); small batches collapse to a single 8-aligned tile.
    tb = _round_up(min(tile_b, _round_up(b, 8)), 8)
    b_pad = _round_up(b, tb)
    if b_pad != b:
        x = jnp.pad(x, ((0, b_pad - b), (0, 0)))

    vmem = pltpu.MemorySpace.VMEM
    const2 = lambda i: (0, 0)           # weights/bias resident across steps
    kernel = _make_fused_kernel(eh, z, ndh, ndo, slab_w)

    flops = 2 * b_pad * (d_in * eh + eh * z + z * ndh + ndh * ndo)
    bytes_accessed = int(
        b_pad * d_in * 4                                             # x
        + 2 * (w1_cat.size + wm_cat.size + wd_cat.size + wo_bd.size)  # bf16 weights
        + 4 * bias_cat.size                                          # bias
        + b_pad * slab_w * 4)                                        # output slab

    slab = pl.pallas_call(
        kernel,
        grid=(b_pad // tb,),
        in_specs=[
            pl.BlockSpec((tb, d_in), lambda i: (i, 0), memory_space=vmem),
            pl.BlockSpec(w1_cat.shape, const2, memory_space=vmem),
            pl.BlockSpec(wm_cat.shape, const2, memory_space=vmem),
            pl.BlockSpec(wd_cat.shape, const2, memory_space=vmem),
            pl.BlockSpec(wo_bd.shape, const2, memory_space=vmem),
            pl.BlockSpec(bias_cat.shape, const2, memory_space=vmem),
        ],
        out_specs=pl.BlockSpec((tb, slab_w), lambda i: (i, 0),
                               memory_space=vmem),
        out_shape=jax.ShapeDtypeStruct((b_pad, slab_w), jnp.float32),
        compiler_params=pltpu.CompilerParams(
            dimension_semantics=("parallel",)),   # 2 TCs on v7x; no-op elsewhere
        cost_estimate=pl.CostEstimate(
            flops=flops,
            transcendentals=b_pad * eh,
            bytes_accessed=bytes_accessed),
    )(x, w1_cat, wm_cat, wd_cat, wo_bd, bias_cat)
    return slab[:b]


def _block_diag(mats):
    """Block-diagonal assembly of equally-shaped [R, C] matrices (build time).

    NOTE: fine for small ND/D_out; at large ND the zero padding multiplies
    second-layer FLOPs/VMEM by ND — switch to a batched matmul then.
    """
    n = len(mats)
    r, c = mats[0].shape
    out = jnp.zeros((n * r, n * c), mats[0].dtype)
    for i, m in enumerate(mats):
        out = out.at[i * r:(i + 1) * r, i * c:(i + 1) * c].set(m)
    return out


# ----------------------------------------------------------------------------
# Module wrapper
# ----------------------------------------------------------------------------
class MultipleEncoderDecoderEnsemblePallas:
    """JAX/Pallas port of MultipleEncoderDecoderEnsemble (variational path)."""

    def __init__(self, key, *, ensemble_size, num_decoders,
                 d_in, hidden, latent, dec_hidden, d_out,
                 mult_noise=0.0, tile_b=256):
        self.ensemble_size = ensemble_size
        self.num_decoders = num_decoders
        self.mult_noise = mult_noise
        self.variational = True
        self.d_in = d_in
        self.hidden = hidden
        self.latent = latent
        self.dec_hidden = dec_hidden
        self.d_out = d_out
        self.tile_b = tile_b

        ks = jax.random.split(key, 8)
        s = 0.05
        # raw per-member f32 parameters (kept for reference / parity checks)
        self.enc_w1 = s * jax.random.normal(ks[0], (ensemble_size, d_in, hidden), jnp.float32)
        self.enc_b1 = s * jax.random.normal(ks[1], (ensemble_size, 1, hidden), jnp.float32)
        self.enc_wm = s * jax.random.normal(ks[2], (ensemble_size, hidden, latent), jnp.float32)
        self.enc_bm = s * jax.random.normal(ks[3], (ensemble_size, 1, latent), jnp.float32)
        self.dec_wd = s * jax.random.normal(ks[4], (num_decoders, latent, dec_hidden), jnp.float32)
        self.dec_bd = s * jax.random.normal(ks[5], (num_decoders, 1, dec_hidden), jnp.float32)
        self.dec_wo = s * jax.random.normal(ks[6], (num_decoders, dec_hidden, d_out), jnp.float32)
        self.dec_bo = s * jax.random.normal(ks[7], (num_decoders, 1, d_out), jnp.float32)

        # Fused encoder parameters (built once, outside the hot path).
        E, H, Z = ensemble_size, hidden, latent
        self._w1_cat = (jnp.transpose(self.enc_w1, (1, 0, 2))
                        .reshape(d_in, E * H).astype(jnp.bfloat16))
        self._b1_cat = self.enc_b1.reshape(1, E * H)                          # f32
        self._wm_cat = (self.enc_wm.reshape(E * H, Z) / float(E)).astype(jnp.bfloat16)
        self._bm_mean = jnp.mean(self.enc_bm, axis=0)                         # [1, Z] f32

        # Default: all decoders selected (the demo calls pick_decoders anyway).
        self.decoder_flags = tuple(range(num_decoders))
        self._build_decoder_stack()

    # ---- static decoder selection (cached, no runtime gather) --------------
    def pick_decoders(self, *dis):
        self.decoder_flags = tuple(int(d) for d in dis)
        self._build_decoder_stack()

    def _build_decoder_stack(self):
        flags = self.decoder_flags
        nd = len(flags)
        self._wd_cat = jnp.concatenate(
            [self.dec_wd[i] for i in flags], axis=1).astype(jnp.bfloat16)
        self._wo_bd = _block_diag(
            [self.dec_wo[i] for i in flags]).astype(jnp.bfloat16)
        bd_cat = jnp.concatenate([self.dec_bd[i] for i in flags], axis=1)     # f32
        bo_cat = jnp.concatenate([self.dec_bo[i] for i in flags], axis=1)     # f32
        # Single bias operand: [b1 | bm_mean | bd | bo]
        self._bias_cat = jnp.concatenate(
            [self._b1_cat, self._bm_mean, bd_cat, bo_cat], axis=1)

        eh = self.ensemble_size * self.hidden
        self._seg = (eh, self.latent, nd * self.dec_hidden, nd * self.d_out)
        self._fwd = jax.jit(functools.partial(
            fused_forward,
            eh=eh, z=self.latent,
            ndh=nd * self.dec_hidden, ndo=nd * self.d_out,
            tile_b=self.tile_b))

    # ---- noise --------------------------------------------------------------
    def add_noise(self, x, key=None):
        # Additive noise, matching the PyTorch module: x + mult_noise * randn.
        if self.mult_noise > 0:
            if key is None:
                raise ValueError("mult_noise > 0 requires an explicit PRNG key")
            return x + self.mult_noise * jax.random.normal(key, x.shape, x.dtype)
        return x

    # ---- forward ------------------------------------------------------------
    def __call__(self, x, noise_key=None):
        x_in = self.add_noise(x, noise_key)
        slab = self._fwd(x_in, self._w1_cat, self._wm_cat,
                         self._wd_cat, self._wo_bd, self._bias_cat)

        B = x.shape[0]
        E, H, Z, D_out = self.ensemble_size, self.hidden, self.latent, self.d_out
        eh, _, _, ndo = self._seg
        nd = len(self.decoder_flags)

        # Layout plumbing back to the PyTorch module's output conventions.
        enc_slab = slab[:, 0:eh]
        zs = slab[:, eh:eh + Z]
        dec_slab = slab[:, eh + Z:eh + Z + ndo]
        encodings = jnp.transpose(enc_slab.reshape(B, E, H), (1, 0, 2))       # [E,B,H]
        decodings = [dec_slab[:, i * D_out:(i + 1) * D_out] for i in range(nd)]
        decodings = decodings[0] if nd == 1 else decodings
        return encodings, zs, decodings


if __name__ == "__main__":
    # small, TPU-friendly shapes: E*H = 128 fills a vreg lane exactly.
    B, D_IN, HIDDEN, LATENT, DEC_HIDDEN, D_OUT = 40, 32, 32, 32, 32, 32
    ENSEMBLE_SIZE, NUM_DECODERS = 4, 3

    key = jax.random.PRNGKey(0)
    k_params, k_x = jax.random.split(key)

    # tile_b=16 so the demo exercises the multi-step grid + row padding path
    # (B=40 -> pad 48, grid=(3,)). Production default is tile_b=256.
    model = MultipleEncoderDecoderEnsemblePallas(
        k_params,
        ensemble_size=ENSEMBLE_SIZE,
        num_decoders=NUM_DECODERS,
        d_in=D_IN, hidden=HIDDEN, latent=LATENT,
        dec_hidden=DEC_HIDDEN, d_out=D_OUT,
        mult_noise=0.0, tile_b=16,
    )
    model.pick_decoders(0, 2)

    x = jax.random.normal(k_x, (B, D_IN), jnp.float32)

    encodings, zs, decodings = model(x)
    jax.block_until_ready(encodings)
    jax.block_until_ready(zs)
    dec_list = decodings if isinstance(decodings, list) else [decodings]
    for d in dec_list:
        jax.block_until_ready(d)

    # ---- check 1: mirror the kernel's bf16-rounded math (tight tolerance) ----
    f32 = jnp.float32
    eh, Z, ndh, ndo = model._seg
    w1 = model._w1_cat.astype(f32)
    wm = model._wm_cat.astype(f32)
    wd = model._wd_cat.astype(f32)
    wo = model._wo_bd.astype(f32)
    bias = model._bias_cat
    b1 = bias[:, 0:eh]
    bm = bias[:, eh:eh + Z]
    bd = bias[:, eh + Z:eh + Z + ndh]
    bo = bias[:, eh + Z + ndh:eh + Z + ndh + ndo]

    xb = x.astype(jnp.bfloat16).astype(f32)
    h_m = jnp.tanh(xb @ w1 + b1)
    zs_m = h_m.astype(jnp.bfloat16).astype(f32) @ wm + bm
    hd_m = jnp.maximum(zs_m.astype(jnp.bfloat16).astype(f32) @ wd + bd, 0.0)
    y_m = hd_m.astype(jnp.bfloat16).astype(f32) @ wo + bo

    enc_slab_k = jnp.transpose(encodings, (1, 0, 2)).reshape(B, eh)
    assert jnp.allclose(enc_slab_k, h_m, atol=2e-3), "encoder mismatch (mirrored)"
    assert jnp.allclose(zs, zs_m, atol=2e-3), "zs mismatch (mirrored)"
    for j, out_j in enumerate(dec_list):
        assert jnp.allclose(out_j, y_m[:, j * D_OUT:(j + 1) * D_OUT],
                            atol=2e-3), f"decoder {j} mismatch (mirrored)"

    # ---- check 2: full-precision per-member semantic reference (loose) -------
    h_ref = jnp.tanh(jnp.einsum("bd,edh->ebh", x, model.enc_w1) + model.enc_b1)
    mu_ref = jnp.einsum("ebh,ehz->ebz", h_ref, model.enc_wm) + model.enc_bm
    zs_ref = jnp.mean(mu_ref, axis=0)
    assert jnp.allclose(encodings, h_ref, atol=3e-2), "encoder mismatch (f32 ref)"
    assert jnp.allclose(zs, zs_ref, atol=3e-2), "zs mismatch (f32 ref)"
    for out_i, flag in zip(dec_list, model.decoder_flags):
        hd = jnp.maximum(zs_ref @ model.dec_wd[flag] + model.dec_bd[flag][0], 0.0)
        y_ref = hd @ model.dec_wo[flag] + model.dec_bo[flag][0]
        assert jnp.allclose(out_i, y_ref, atol=3e-2), f"decoder {flag} mismatch (f32 ref)"

    print("KERNEL_OK")
</pallas_src>

<mosaic_0001>
module attributes {stable_mosaic.version = 11 : i64} {
  func.func @kernel(%arg0: i32, %arg1: memref<16x32xf32, #tpu.memory_space<vmem>>, %arg2: memref<32x128xbf16, #tpu.memory_space<vmem>>, %arg3: memref<128x32xbf16, #tpu.memory_space<vmem>>, %arg4: memref<32x64xbf16, #tpu.memory_space<vmem>>, %arg5: memref<64x64xbf16, #tpu.memory_space<vmem>>, %arg6: memref<1x288xf32, #tpu.memory_space<vmem>>, %arg7: memref<16x256xf32, #tpu.memory_space<vmem>>) attributes {dimension_semantics = [#tpu.dimension_semantics<parallel>], iteration_bounds = array<i64: 3>, scalar_prefetch = 0 : i64, scratch_operands = 0 : i64, tpu.core_type = #tpu.core_type<tc>, window_params = [{transform_indices = @transform_0, window_bounds = array<i64: 16, 32>}, {pipeline_mode = #tpu.pipeline_mode<synchronous>, transform_indices = @transform_1, window_bounds = array<i64: 32, 128>}, {pipeline_mode = #tpu.pipeline_mode<synchronous>, transform_indices = @transform_2, window_bounds = array<i64: 128, 32>}, {pipeline_mode = #tpu.pipeline_mode<synchronous>, transform_indices = @transform_3, window_bounds = array<i64: 32, 64>}, {pipeline_mode = #tpu.pipeline_mode<synchronous>, transform_indices = @transform_4, window_bounds = array<i64: 64, 64>}, {pipeline_mode = #tpu.pipeline_mode<synchronous>, transform_indices = @transform_5, window_bounds = array<i64: 1, 288>}, {transform_indices = @transform_6, window_bounds = array<i64: 16, 256>}]} {
    %c0 = arith.constant 0 : index
    %c0_0 = arith.constant 0 : index
    %0 = vector.load %arg6[%c0, %c0_0] : memref<1x288xf32, #tpu.memory_space<vmem>>, vector<1x128xf32>
    %c0_1 = arith.constant 0 : index
    %c128 = arith.constant 128 : index
    %1 = vector.load %arg6[%c0_1, %c128] : memref<1x288xf32, #tpu.memory_space<vmem>>, vector<1x32xf32>
    %c0_2 = arith.constant 0 : index
    %c160 = arith.constant 160 : index
    %2 = vector.load %arg6[%c0_2, %c160] : memref<1x288xf32, #tpu.memory_space<vmem>>, vector<1x64xf32>
    %c0_3 = arith.constant 0 : index
    %c224 = arith.constant 224 : index
    %3 = vector.load %arg6[%c0_3, %c224] : memref<1x288xf32, #tpu.memory_space<vmem>>, vector<1x64xf32>
    %c0_4 = arith.constant 0 : index
    %c0_5 = arith.constant 0 : index
    %4 = vector.load %arg1[%c0_4, %c0_5] : memref<16x32xf32, #tpu.memory_space<vmem>>, vector<16x32xf32>
    %5 = arith.truncf %4 : vector<16x32xf32> to vector<16x32xbf16>
    %c0_6 = arith.constant 0 : index
    %c0_7 = arith.constant 0 : index
    %6 = vector.load %arg2[%c0_6, %c0_7] : memref<32x128xbf16, #tpu.memory_space<vmem>>, vector<32x128xbf16>
    %cst = arith.constant dense<0.000000e+00> : vector<16x128xf32>
    %7 = tpu.matmul %5, %6, %cst {dimension_numbers = #tpu.dot_dimension_numbers<[1], [0], [0], [1], [0, 0, 1, 1], [], []>} : vector<16x32xbf16>, vector<32x128xbf16>, vector<16x128xf32> -> vector<16x128xf32>
    %8 = vector.broadcast %0 : vector<1x128xf32> to vector<16x128xf32>
    %9 = arith.addf %7, %8 : vector<16x128xf32>
    %10 = math.tanh %9 : vector<16x128xf32>
    %11 = arith.truncf %10 : vector<16x128xf32> to vector<16x128xbf16>
    %c0_8 = arith.constant 0 : index
    %c0_9 = arith.constant 0 : index
    %12 = vector.load %arg3[%c0_8, %c0_9] : memref<128x32xbf16, #tpu.memory_space<vmem>>, vector<128x32xbf16>
    %cst_10 = arith.constant dense<0.000000e+00> : vector<16x32xf32>
    %13 = tpu.matmul %11, %12, %cst_10 {dimension_numbers = #tpu.dot_dimension_numbers<[1], [0], [0], [1], [0, 0, 1, 1], [], []>} : vector<16x128xbf16>, vector<128x32xbf16>, vector<16x32xf32> -> vector<16x32xf32>
    %14 = vector.broadcast %1 : vector<1x32xf32> to vector<16x32xf32>
    %15 = arith.addf %13, %14 : vector<16x32xf32>
    %16 = arith.truncf %15 : vector<16x32xf32> to vector<16x32xbf16>
    %c0_11 = arith.constant 0 : index
    %c0_12 = arith.constant 0 : index
    %17 = vector.load %arg4[%c0_11, %c0_12] : memref<32x64xbf16, #tpu.memory_space<vmem>>, vector<32x64xbf16>
    %cst_13 = arith.constant dense<0.000000e+00> : vector<16x64xf32>
    %18 = tpu.matmul %16, %17, %cst_13 {dimension_numbers = #tpu.dot_dimension_numbers<[1], [0], [0], [1], [0, 0, 1, 1], [], []>} : vector<16x32xbf16>, vector<32x64xbf16>, vector<16x64xf32> -> vector<16x64xf32>
    %19 = vector.broadcast %2 : vector<1x64xf32> to vector<16x64xf32>
    %20 = arith.addf %18, %19 : vector<16x64xf32>
    %cst_14 = arith.constant 0.000000e+00 : f32
    %21 = vector.broadcast %cst_14 : f32 to vector<16x64xf32>
    %22 = arith.maximumf %20, %21 : vector<16x64xf32>
    %23 = arith.truncf %22 : vector<16x64xf32> to vector<16x64xbf16>
    %c0_15 = arith.constant 0 : index
    %c0_16 = arith.constant 0 : index
    %24 = vector.load %arg5[%c0_15, %c0_16] : memref<64x64xbf16, #tpu.memory_space<vmem>>, vector<64x64xbf16>
    %cst_17 = arith.constant dense<0.000000e+00> : vector<16x64xf32>
    %25 = tpu.matmul %23, %24, %cst_17 {dimension_numbers = #tpu.dot_dimension_numbers<[1], [0], [0], [1], [0, 0, 1, 1], [], []>} : vector<16x64xbf16>, vector<64x64xbf16>, vector<16x64xf32> -> vector<16x64xf32>
    %26 = vector.broadcast %3 : vector<1x64xf32> to vector<16x64xf32>
    %27 = arith.addf %25, %26 : vector<16x64xf32>
    %c0_18 = arith.constant 0 : index
    %c0_19 = arith.constant 0 : index
    %28 = vector.load %arg7[%c0_18, %c0_19] : memref<16x256xf32, #tpu.memory_space<vmem>>, vector<16x128xf32>
    tpu.vector_store %arg7[%c0_18, %c0_19], %10 {strides = array<i32>} : memref<16x256xf32, #tpu.memory_space<vmem>>, vector<16x128xf32>,
    %c0_20 = arith.constant 0 : index
    %c128_21 = arith.constant 128 : index
    %29 = vector.load %arg7[%c0_20, %c128_21] : memref<16x256xf32, #tpu.memory_space<vmem>>, vector<16x32xf32>
    tpu.vector_store %arg7[%c0_20, %c128_21], %15 {strides = array<i32>} : memref<16x256xf32, #tpu.memory_space<vmem>>, vector<16x32xf32>,
    %c0_22 = arith.constant 0 : index
    %c160_23 = arith.constant 160 : index
    %30 = vector.load %arg7[%c0_22, %c160_23] : memref<16x256xf32, #tpu.memory_space<vmem>>, vector<16x64xf32>
    tpu.vector_store %arg7[%c0_22, %c160_23], %27 {strides = array<i32>} : memref<16x256xf32, #tpu.memory_space<vmem>>, vector<16x64xf32>,
    %cst_24 = arith.constant 0.000000e+00 : f32
    %31 = vector.broadcast %cst_24 : f32 to vector<16x32xf32>
    %c0_25 = arith.constant 0 : index
    %c224_26 = arith.constant 224 : index
    %32 = vector.load %arg7[%c0_25, %c224_26] : memref<16x256xf32, #tpu.memory_space<vmem>>, vector<16x32xf32>
    tpu.vector_store %arg7[%c0_25, %c224_26], %31 {strides = array<i32>} : memref<16x256xf32, #tpu.memory_space<vmem>>, vector<16x32xf32>,
    return
  }
  func.func @transform_0(%arg0: i32) -> (i32, i32) {
    %c0_i32 = arith.constant 0 : i32
    %c0_i32_0 = arith.constant 0 : i32
    return %arg0, %c0_i32 : i32, i32
  }
  func.func @transform_1(%arg0: i32) -> (i32, i32) {
    %c0_i32 = arith.constant 0 : i32
    %c0_i32_0 = arith.constant 0 : i32
    %c0_i32_1 = arith.constant 0 : i32
    return %c0_i32, %c0_i32_0 : i32, i32
  }
  func.func @transform_2(%arg0: i32) -> (i32, i32) {
    %c0_i32 = arith.constant 0 : i32
    %c0_i32_0 = arith.constant 0 : i32
    %c0_i32_1 = arith.constant 0 : i32
    return %c0_i32, %c0_i32_0 : i32, i32
  }
  func.func @transform_3(%arg0: i32) -> (i32, i32) {
    %c0_i32 = arith.constant 0 : i32
    %c0_i32_0 = arith.constant 0 : i32
    %c0_i32_1 = arith.constant 0 : i32
    return %c0_i32, %c0_i32_0 : i32, i32
  }
  func.func @transform_4(%arg0: i32) -> (i32, i32) {
    %c0_i32 = arith.constant 0 : i32
    %c0_i32_0 = arith.constant 0 : i32
    %c0_i32_1 = arith.constant 0 : i32
    return %c0_i32, %c0_i32_0 : i32, i32
  }
  func.func @transform_5(%arg0: i32) -> (i32, i32) {
    %c0_i32 = arith.constant 0 : i32
    %c0_i32_0 = arith.constant 0 : i32
    %c0_i32_1 = arith.constant 0 : i32
    return %c0_i32, %c0_i32_0 : i32, i32
  }
  func.func @transform_6(%arg0: i32) -> (i32, i32) {
    %c0_i32 = arith.constant 0 : i32
    %c0_i32_0 = arith.constant 0 : i32
    return %arg0, %c0_i32 : i32, i32
  }
}

</mosaic_0001>

<bundles_post_ra>
// kernel: fused_forward.1
= control target key start
LH: loop header
LB: loop body
LE: loop exit
PB: predicated region body
PF: predicated region fallthrough
CT: control target
= control target key end

     0   :  { %s719_s21 = smov 0   ;;  %s808_s0 = inlined_call_operand.vmem [shape: f32[48,32], index: 0, kind: input, shape index: {}]   ;;  %s809_s1 = inlined_call_operand.vmem [shape: bf16[32,128], index: 1, kind: input, shape index: {}]   ;;  %s810_s2 = inlined_call_operand.vmem [shape: bf16[128,32], index: 2, kind: input, shape index: {}]   ;;  %s811_s3 = inlined_call_operand.vmem [shape: bf16[32,64], index: 3, kind: input, shape index: {}]   ;;  %s812_s4 = inlined_call_operand.vmem [shape: bf16[64,64], index: 4, kind: input, shape index: {}]   ;;  %s813_s5 = inlined_call_operand.vmem [shape: f32[1,288], index: 5, kind: input, shape index: {}]   ;;  %s814_s6 = inlined_call_operand.vmem [shape: f32[48,256], index: 6, kind: output, shape index: {}]  }
   0x1 LB: > { %s560_s22 = sadd.s32 4294967295, %s679_s21   ;;  %p564_p0 = scmp.ge.s32.totalorder %s679_s21, 1  ;;  %s679_s21 = sphi %s719_s21, %s16_s21  }
   0x2   : > { %p213_p1 = scmp.lt.s32.totalorder %s679_s21, 4 }
   0x4   : > { %p214_p2 = pnand %p564_p0, %p213_p1 }
   0x5   : > { %s565_s25 = sshll.u32 (!%p214_p2), %s560_s22, 1  ;;  %s682_s26 = smov (!%p214_p2), 32  }
   0x6   : > { %217 = sbr.rel (%p214_p2) target bundleno = 699 (0x2bb), region = 44  ;;  %p245_p3 = scmp.lt.s32.totalorder (!%p214_p2), %s565_s25, 5 }
   0xb   : > { %v641_v0 = vld [vmem:[%s809_s1 + $0x8] sm:$0xff]  ;;  %v649_v1 = vld [vmem:[%s810_s2 + $0x38] sm:$0xff]  ;;  %v640_v2 = vld [vmem:[%s809_s1] sm:$0xff]  ;;  %s816_s25 = smov (!%p245_p3, %s565_s25), 5  ;;  %vm283_vm0 = vcmask 261120   ;;  %vm466_vm1 = vcmask 523264  }
   0xc   : > { %293 = vmatpush.bf16.msra.mxu0 %v641_v0  ;;  %371 = vmatpush.bf16.msra.mxu1 %v649_v1  ;;  %v648_v3 = vld [vmem:[%s810_s2 + $0x30] sm:$0xff]  ;;  %s566_s8 = sshll.u32 %s816_s25, 3  ;;  %v647_v4 = vld [vmem:[%s810_s2 + $0x28] sm:$0xff]  ;;  %v646_v8 = vld [vmem:[%s810_s2 + $0x20] sm:$0xff]  ;;  %s639_s28 = sshll.u32 %s816_s25, 4  ;;  %vm496_vm2 = vcmask 785664  }
   0xd   : > { %s248_s11 = scalar_lea.vmem %s808_s0, %s566_s8  ;;  %v645_v9 = vld [vmem:[%s810_s2 + $0x18] sm:$0xff]  ;;  %v644_v10 = vld [vmem:[%s810_s2 + $0x10] sm:$0xff]  ;;  %v643_v11 = vld [vmem:[%s810_s2 + $0x8] sm:$0xff]  ;;  %s767_s7 = scalar_lea.vmem %s814_s6, %s639_s28  ;;  %vm499_vm3 = vcmask 1048320   ;;  %v683_v53 = vmov 0.0  }
   0xe   : > { %v261_v5 = vld [vmem:[%s248_s11] sm:$0xff]  ;;  %v262_v6 = vld [vmem:[%s248_s11 + $0x8] sm:$0xff]  ;;  %s681_s25 = smov 96   ;;  %v655_v24 = vld [vmem:[%s812_s4 + $0x18] sm:$0xff] }
   0xf   : > { %v263_v7 = vpack.c.bf16 %v262_v6, %v261_v5  ;;  %v642_v12 = vld [vmem:[%s810_s2] sm:$0xff]  ;;  %v651_v22 = vld [vmem:[%s811_s3 + $0x8] sm:$0xff]  ;;  %474 = vmatpush.bf16.msra.mxu3 %v655_v24  ;;  %v654_v30 = vld [vmem:[%s812_s4 + $0x10] sm:$0xff] }
  0x10   : > { %294 = vmatpush.bf16.msra.mxu0 %v640_v2  ;;  %372 = vmatpush.bf16.msra.mxu1 %v648_v3  ;;  %v667_v13 = vld [vmem:[%s813_s5] ss:$0 sm:$0xff]  ;;  %v668_v21 = vld [vmem:[%s813_s5 + $0x1] ss:$0 sm:$0xff]  ;;  %v653_v31 = vld [vmem:[%s812_s4 + $0x8] sm:$0xff] }
  0x11   : > { %402 = vrot.lane.b32.xlu0 %v668_v21, %s681_s25  ;;  %414 = vmatpush.bf16.msra.mxu2 %v651_v22  ;;  %v650_v23 = vld [vmem:[%s811_s3] sm:$0xff] }
  0x12   : > { %v652_v32 = vld [vmem:[%s812_s4] sm:$0xff] }
  0x13   : > { %578 = vmatmul.msk.bf16.vlgmr.msra.gmra.mxu0 %vm283_vm0, %v263_v7  ;;  %475 = vmatpush.bf16.msra.mxu3 %v654_v30  ;;  %v260_v33 = vld [vmem:[%s813_s5 + $0x1] sm:$0x3] }
  0x14   : > { %373 = vmatpush.bf16.msra.mxu1 %v647_v4  ;;  %v435_v34 = vperm.slane %v260_v33, 1  ;;  %v434_v35 = vperm.slane %v260_v33, 0 }
  0x15   : > { %415 = vmatpush.bf16.msra.mxu2 %v650_v23 }
  0x16   : > { %462 = vrot.lane.b32.xlu1 %v435_v34, %s682_s26 }
  0x17   : > { %476 = vmatpush.bf16.msra.mxu3 %v653_v31 }
  0x18   : > { %374 = vmatpush.bf16.msra.mxu1 %v646_v8 }
  0x19   : > { %460 = vrot.lane.b32.xlu0 %v434_v35, %s682_s26 }
  0x1b   : > { %477 = vmatpush.bf16.msra.mxu3 %v652_v32 }
  0x1c   : > { %375 = vmatpush.bf16.msra.mxu1 %v645_v9 }
  0x20   : > { %376 = vmatpush.bf16.msra.mxu1 %v644_v10 }
  0x24   : > { %377 = vmatpush.bf16.msra.mxu1 %v643_v11 }
  0x28   : > { %378 = vmatpush.bf16.msra.mxu1 %v642_v12 }
  0x83   : > { %v403_v37 = vpop.permute.xlu0 %402 }
  0x88   : > { %v463_v44 = vpop.permute.xlu1 %462 }
  0x8b   : > { %v461_v45 = vpop.permute.xlu0 %460 }
  0x8c   : > { %v464_v46 = vsel %vm283_vm0, %v461_v45, %v463_v44 }
  0x90   : > { %v296_v14 = vpop.f32.mrf.mxu0 }
  0x91   : > { %v297_v15 = vadd.f32 %v667_v13, %v296_v14 }
  0x93   : > { %669 = vtanh.f32 %v297_v15 }
  0x98   : > { %v298_v16 = vpop.f32.mrf.mxu0 }
  0x99   : > { %v670_v17 = vpop.eup %669  ;;  %v299_v18 = vadd.f32 %v667_v13, %v298_v16 }
  0x9a   : > { %484 = vst [vmem:[%s767_s7] sm:$0xff] %v670_v17 }
  0x9b   : > { %671 = vtanh.f32 %v299_v18 }
  0xa1   : > { %v672_v19 = vpop.eup %671 }
  0xa2   : > { %485 = vst [vmem:[%s767_s7 + $0x10] sm:$0xff] %v672_v19  ;;  %v303_v20 = vpack.c.bf16 %v672_v19, %v670_v17 }
  0xa4   : > { %379 = vmatmul.bf16.vlgmr.msra.gmra.mxu1 %v303_v20 }
 0x121   : > { %v380_v25 = vpop.f32.mrf.mxu1 }
 0x122   : > { %v381_v26 = vadd.f32 %v668_v21, %v380_v25 }
 0x124   : > { %486 = vst.msk [vmem:[%s767_s7 + $0x8] sm:$0xff] %vm283_vm0, %v381_v26 }
 0x129   : > { %v382_v27 = vpop.f32.mrf.mxu1 }
 0x12a   : > { %v383_v28 = vadd.f32 %v668_v21, %v382_v27 }
 0x12c   : > { %v385_v29 = vpack.c.bf16 %v383_v28, %v381_v26  ;;  %487 = vst.msk [vmem:[%s767_s7 + $0x18] sm:$0xff] %vm283_vm0, %v383_v28 }
 0x12e   : > { %619 = vmatmul.msk.bf16.vlgmr.msra.gmra.mxu2 %vm283_vm0, %v385_v29 }
 0x1b1   : > { %v417_v36 = vpop.f32.mrf.mxu2 }
 0x1b2   : > { %v418_v38 = vadd.f32 %v417_v36, %v403_v37 }
 0x1b4   : > { %v422_v41 = vmax.f32 %v418_v38, 0.0 }
 0x1b9   : > { %v419_v39 = vpop.f32.mrf.mxu2 }
 0x1ba   : > { %v420_v40 = vadd.f32 %v419_v39, %v403_v37 }
 0x1bc   : > { %v423_v42 = vmax.f32 %v420_v40, 0.0 }
 0x1be   : > { %v424_v43 = vpack.c.bf16 %v423_v42, %v422_v41 }
 0x1c0   : > { %636 = vmatmul.msk.bf16.vlgmr.msra.gmra.mxu3 %vm466_vm1, %v424_v43 }
 0x243   : > { %v479_v47 = vpop.f32.mrf.mxu3 }
 0x244   : > { %v480_v48 = vadd.f32 %v479_v47, %v464_v46 }
 0x246   : > { %490 = vrot.lane.b32.xlu1 %v480_v48, %s682_s26 }
 0x24b   : > { %v481_v49 = vpop.f32.mrf.mxu3 }
 0x24c   : > { %v482_v50 = vadd.f32 %v481_v49, %v464_v46 }
 0x24e   : > { %492 = vrot.lane.b32.xlu2 %v482_v50, %s682_s26 }
 0x2a8   : > { %v493_v52 = vpop.permute.xlu2 %492 }
 0x2a9   : > { %498 = vst.msk [vmem:[%s767_s7 + $0x18] sm:$0xff] %vm496_vm2, %v493_v52 }
 0x2aa   : > { %501 = vst.msk [vmem:[%s767_s7 + $0x18] sm:$0xff] %vm499_vm3, %v683_v53 }
 0x2b8   : > { %v491_v51 = vpop.permute.xlu1 %490 }
 0x2b9   : > { %497 = vst.msk [vmem:[%s767_s7 + $0x8] sm:$0xff] %vm496_vm2, %v491_v51 }
 0x2ba   : > { %500 = vst.msk [vmem:[%s767_s7 + $0x8] sm:$0xff] %vm499_vm3, %v683_v53 }
 0x2bb PF: > { %s16_s21 = sadd.s32 1, %s679_s21  }
 0x2bc   : > { %p13_p4 = scmp.ge.s32.totalorder %s16_s21, 5  }
 0x2be   :  { %15 = sbr.rel (!%p13_p4) target bundleno = 1 (0x1), region = 74 }

</bundles_post_ra>
